<compile_context>
chip_gen: v6e
topology: v6e:2x2x1
jax: 0.10.0
libtpu: 0.0.40
codegen_flags: <defaults>
</compile_context>

<pallas_src>
import functools

import jax
import jax.numpy as jnp
from jax.experimental import pallas as pl
from jax.experimental.pallas import tpu as pltpu

_LANE = 128


# --------------------------------------------------------------------------
# Kernel body: one lane-dense (L, T) block, time on sublanes, lanes dense.
# --------------------------------------------------------------------------
def _decomp_kernel(x_ref, res_ref, mean_ref, *, kernel_size, pad):
    L, _ = x_ref.shape
    f32 = jnp.float32
    inv_k = 1.0 / kernel_size
    mid = L - 2 * pad  # rows whose k-tap window never touches an edge

    # ---- interior rows t in [pad, L - pad): plain k-tap sliding sum -------
    if mid > 0:
        acc = x_ref[0:mid, :].astype(f32)
        for w in range(1, kernel_size):
            acc = acc + x_ref[w:w + mid, :].astype(f32)
        mean_mid = acc * inv_k
        mean_ref[pad:pad + mid, :] = mean_mid.astype(mean_ref.dtype)
        res_ref[pad:pad + mid, :] = (
            x_ref[pad:pad + mid, :].astype(f32) - mean_mid).astype(res_ref.dtype)

    if pad == 0:
        return

    x0 = x_ref[0:1, :].astype(f32)      # first row (edge-replicated at front)
    xe = x_ref[L - 1:L, :].astype(f32)  # last row  (edge-replicated at back)

    # ---- front edge rows t = 0 .. pad-1 ------------------------------------
    # k * mean[t] = (pad - t) * x[0] + sum_{j=0}^{t+pad} x[j]
    acc = x0 * float(pad)
    for j in range(pad + 1):
        acc = acc + x_ref[j:j + 1, :].astype(f32)
    for t in range(pad):
        mean_row = acc * inv_k
        mean_ref[t:t + 1, :] = mean_row.astype(mean_ref.dtype)
        res_ref[t:t + 1, :] = (
            x_ref[t:t + 1, :].astype(f32) - mean_row).astype(res_ref.dtype)
        if t + 1 < pad:
            acc = acc - x0 + x_ref[t + pad + 1:t + pad + 2, :].astype(f32)

    # ---- back edge rows t = L-pad .. L-1 (walked from t = L-1 downward) ----
    # k * mean[t] = (t - (L-1-pad)) * x[L-1] + sum_{j=t-pad}^{L-1} x[j]
    acc = xe * float(pad)
    for j in range(L - 1 - pad, L):
        acc = acc + x_ref[j:j + 1, :].astype(f32)
    for i in range(pad):
        t = L - 1 - i
        mean_row = acc * inv_k
        mean_ref[t:t + 1, :] = mean_row.astype(mean_ref.dtype)
        res_ref[t:t + 1, :] = (
            x_ref[t:t + 1, :].astype(f32) - mean_row).astype(res_ref.dtype)
        if i + 1 < pad:
            acc = acc - xe + x_ref[t - 1 - pad:t - pad, :].astype(f32)


# --------------------------------------------------------------------------
# Generation-aware tile sizing.
# --------------------------------------------------------------------------
def _vmem_capacity_bytes():
    try:
        return int(pltpu.get_tpu_info().vmem_capacity_bytes)
    except Exception:
        return 64 * 1024 * 1024  # conservative (v7x-sized)


def _budgets():
    vmem = _vmem_capacity_bytes()
    if vmem >= 100 * 1024 * 1024:                     # v5e / v6e: 128 MiB VMEM
        return 6 * 1024 * 1024, 64 * 1024 * 1024
    return int(2.5 * 1024 * 1024), 32 * 1024 * 1024   # v7x: 64 MiB VMEM


def _choose_lane_tile(L, N, block_budget, min_steps=4):
    lanes_full = pl.cdiv(N, _LANE) * _LANE
    tn = (block_budget // (4 * max(L, 1)) // _LANE) * _LANE
    tn = max(_LANE, min(tn, lanes_full, 64 * _LANE))
    while tn > _LANE and pl.cdiv(lanes_full, tn) < min_steps:
        tn -= _LANE
    return tn


def _choose_channel_tile(L, C, B, block_budget, min_steps=4):
    # Caller guarantees C % 128 == 0.
    tc = (block_budget // (4 * max(L, 1)) // _LANE) * _LANE
    tc = max(_LANE, min(tc, C))
    while C % tc != 0:
        tc -= _LANE
    while tc > _LANE and B * (C // tc) < min_steps:
        tc -= _LANE
        while C % tc != 0:
            tc -= _LANE
    return tc


# --------------------------------------------------------------------------
# Wrapper.
# --------------------------------------------------------------------------
def series_decomp(x, kernel_size, *, lane_tile=None, interpret=False):
    """Series decomposition. x: (B, L, C). Returns (res, moving_mean)."""
    if kernel_size % 2 != 1:
        raise ValueError(
            "series_decomp requires an odd kernel_size: the reference module's "
            "AvgPool1d + (k-1)//2 edge padding only preserves length L for odd k.")
    if lane_tile is not None and (lane_tile < _LANE or lane_tile % _LANE != 0):
        raise ValueError("lane_tile must be a positive multiple of 128.")

    B, L, C = x.shape
    pad = (kernel_size - 1) // 2

    if L < 2 * pad:
        # Degenerate shapes (window clamps at both ends simultaneously).
        return _reference_series_decomp(x, kernel_size)

    block_budget, vmem_limit = _budgets()
    kernel = functools.partial(_decomp_kernel, kernel_size=kernel_size, pad=pad)
    itemsize = jnp.dtype(x.dtype).itemsize

    # ---------------- fast path: channels already fill lanes ----------------
    if C % _LANE == 0:
        TC = lane_tile if lane_tile is not None else _choose_channel_tile(
            L, C, B, block_budget)
        if C % TC != 0:
            TC = _LANE
        cost = pl.CostEstimate(
            flops=(kernel_size + 2) * B * L * C, transcendentals=0,
            bytes_accessed=3 * B * L * C * itemsize)
        res, mean = pl.pallas_call(
            kernel,
            out_shape=(jax.ShapeDtypeStruct((B, L, C), x.dtype),
                       jax.ShapeDtypeStruct((B, L, C), x.dtype)),
            grid=(B, C // TC),
            in_specs=[pl.BlockSpec((None, L, TC), lambda b, c: (b, 0, c))],
            out_specs=(pl.BlockSpec((None, L, TC), lambda b, c: (b, 0, c)),
                       pl.BlockSpec((None, L, TC), lambda b, c: (b, 0, c))),
            compiler_params=pltpu.CompilerParams(
                dimension_semantics=("parallel", "parallel"),
                vmem_limit_bytes=vmem_limit),
            cost_estimate=cost,
            interpret=interpret,
        )(x)
        return res, mean

    # ------------- general path: repack to lane-dense (L, B*C) --------------
    N = B * C
    x2 = jnp.transpose(x, (1, 0, 2)).reshape(L, N)
    TN = lane_tile if lane_tile is not None else _choose_lane_tile(
        L, N, block_budget)
    Np = pl.cdiv(N, TN) * TN
    if Np != N:
        x2 = jnp.pad(x2, ((0, 0), (0, Np - N)))  # padded lanes are discarded

    cost = pl.CostEstimate(
        flops=(kernel_size + 2) * L * Np, transcendentals=0,
        bytes_accessed=3 * L * Np * itemsize)
    res2, mean2 = pl.pallas_call(
        kernel,
        out_shape=(jax.ShapeDtypeStruct((L, Np), x.dtype),
                   jax.ShapeDtypeStruct((L, Np), x.dtype)),
        grid=(Np // TN,),
        in_specs=[pl.BlockSpec((L, TN), lambda j: (0, j))],
        out_specs=(pl.BlockSpec((L, TN), lambda j: (0, j)),
                   pl.BlockSpec((L, TN), lambda j: (0, j))),
        # x2 is a dead temporary after the call -> reuse its HBM buffer for
        # `res`.  Safe only because input/output use identical, disjoint
        # blocks; drop this alias if a halo/overlapping L-grid dim is added.
        input_output_aliases={0: 0},
        compiler_params=pltpu.CompilerParams(
            dimension_semantics=("parallel",),
            vmem_limit_bytes=vmem_limit),
        cost_estimate=cost,
        interpret=interpret,
    )(x2)

    res = res2[:, :N].reshape(L, B, C).transpose(1, 0, 2)
    mean = mean2[:, :N].reshape(L, B, C).transpose(1, 0, 2)
    return res, mean


# --------------------------------------------------------------------------
# Plain-JAX reference matching the PyTorch semantics (also degenerate fallback).
# --------------------------------------------------------------------------
def _reference_series_decomp(x, kernel_size):
    pad = (kernel_size - 1) // 2
    front = jnp.repeat(x[:, 0:1, :], pad, axis=1)
    end = jnp.repeat(x[:, -1:, :], pad, axis=1)
    xpad = jnp.concatenate([front, x, end], axis=1)
    L = x.shape[1]
    windows = jnp.stack(
        [xpad[:, w:w + L, :] for w in range(kernel_size)], axis=0)
    mean = jnp.mean(windows, axis=0)
    return x - mean, mean


if __name__ == "__main__":
    key = jax.random.PRNGKey(0)
    k_small, k_wide = jax.random.split(key)
    kernel_size = 5  # odd, as in the original usage (so output length == L)

    # 1) Small-C case -> lane-dense repack path.
    B, L, C = 2, 16, 8
    x = jax.random.normal(k_small, (B, L, C), dtype=jnp.float32)
    res, mean = series_decomp(x, kernel_size)
    jax.block_until_ready((res, mean))
    res_exp, mean_exp = _reference_series_decomp(x, kernel_size)
    assert res.shape == (B, L, C) and mean.shape == (B, L, C)
    assert jnp.allclose(mean, mean_exp, atol=1e-5, rtol=1e-5)
    assert jnp.allclose(res, res_exp, atol=1e-5, rtol=1e-5)

    # 2) Lane-friendly C (C % 128 == 0) -> no-repack fast path.
    Bw, Lw, Cw = 2, 16, 128
    xw = jax.random.normal(k_wide, (Bw, Lw, Cw), dtype=jnp.float32)
    resw, meanw = series_decomp(xw, kernel_size)
    jax.block_until_ready((resw, meanw))
    resw_exp, meanw_exp = _reference_series_decomp(xw, kernel_size)
    assert jnp.allclose(meanw, meanw_exp, atol=1e-5, rtol=1e-5)
    assert jnp.allclose(resw, resw_exp, atol=1e-5, rtol=1e-5)

    print("KERNEL_OK")
</pallas_src>

<mosaic_0001>
module attributes {stable_mosaic.version = 11 : i64} {
  func.func @_decomp_kernel(%arg0: i32, %arg1: memref<16x128xf32, #tpu.memory_space<vmem>>, %arg2: memref<16x128xf32, #tpu.memory_space<vmem>>, %arg3: memref<16x128xf32, #tpu.memory_space<vmem>>) attributes {dimension_semantics = [#tpu.dimension_semantics<parallel>], iteration_bounds = array<i64: 1>, scalar_prefetch = 0 : i64, scratch_operands = 0 : i64, tpu.core_type = #tpu.core_type<tc>, window_params = [{transform_indices = @transform_0, window_bounds = array<i64: 16, 128>}, {transform_indices = @transform_1, window_bounds = array<i64: 16, 128>}, {transform_indices = @transform_2, window_bounds = array<i64: 16, 128>}]} {
    %c0 = arith.constant 0 : index
    %c0_0 = arith.constant 0 : index
    %0 = vector.load %arg1[%c0, %c0_0] : memref<16x128xf32, #tpu.memory_space<vmem>>, vector<12x128xf32>
    %c1 = arith.constant 1 : index
    %c0_1 = arith.constant 0 : index
    %1 = vector.load %arg1[%c1, %c0_1] : memref<16x128xf32, #tpu.memory_space<vmem>>, vector<12x128xf32>
    %2 = arith.addf %0, %1 : vector<12x128xf32>
    %c2 = arith.constant 2 : index
    %c0_2 = arith.constant 0 : index
    %3 = vector.load %arg1[%c2, %c0_2] : memref<16x128xf32, #tpu.memory_space<vmem>>, vector<12x128xf32>
    %4 = arith.addf %2, %3 : vector<12x128xf32>
    %c3 = arith.constant 3 : index
    %c0_3 = arith.constant 0 : index
    %5 = vector.load %arg1[%c3, %c0_3] : memref<16x128xf32, #tpu.memory_space<vmem>>, vector<12x128xf32>
    %6 = arith.addf %4, %5 : vector<12x128xf32>
    %c4 = arith.constant 4 : index
    %c0_4 = arith.constant 0 : index
    %7 = vector.load %arg1[%c4, %c0_4] : memref<16x128xf32, #tpu.memory_space<vmem>>, vector<12x128xf32>
    %8 = arith.addf %6, %7 : vector<12x128xf32>
    %cst = arith.constant 2.000000e-01 : f32
    %9 = vector.broadcast %cst : f32 to vector<12x128xf32>
    %10 = arith.mulf %8, %9 : vector<12x128xf32>
    %c2_5 = arith.constant 2 : index
    %c0_6 = arith.constant 0 : index
    %11 = vector.load %arg3[%c2_5, %c0_6] : memref<16x128xf32, #tpu.memory_space<vmem>>, vector<12x128xf32>
    tpu.vector_store %arg3[%c2_5, %c0_6], %10 {strides = array<i32>} : memref<16x128xf32, #tpu.memory_space<vmem>>, vector<12x128xf32>,
    %c2_7 = arith.constant 2 : index
    %c0_8 = arith.constant 0 : index
    %12 = vector.load %arg1[%c2_7, %c0_8] : memref<16x128xf32, #tpu.memory_space<vmem>>, vector<12x128xf32>
    %13 = arith.subf %12, %10 : vector<12x128xf32>
    %c2_9 = arith.constant 2 : index
    %c0_10 = arith.constant 0 : index
    %14 = vector.load %arg2[%c2_9, %c0_10] : memref<16x128xf32, #tpu.memory_space<vmem>>, vector<12x128xf32>
    tpu.vector_store %arg2[%c2_9, %c0_10], %13 {strides = array<i32>} : memref<16x128xf32, #tpu.memory_space<vmem>>, vector<12x128xf32>,
    %c0_11 = arith.constant 0 : index
    %c0_12 = arith.constant 0 : index
    %15 = vector.load %arg1[%c0_11, %c0_12] : memref<16x128xf32, #tpu.memory_space<vmem>>, vector<1x128xf32>
    %c15 = arith.constant 15 : index
    %c0_13 = arith.constant 0 : index
    %16 = vector.load %arg1[%c15, %c0_13] : memref<16x128xf32, #tpu.memory_space<vmem>>, vector<1x128xf32>
    %cst_14 = arith.constant 2.000000e+00 : f32
    %17 = vector.broadcast %cst_14 : f32 to vector<1x128xf32>
    %18 = arith.mulf %15, %17 : vector<1x128xf32>
    %c0_15 = arith.constant 0 : index
    %c0_16 = arith.constant 0 : index
    %19 = vector.load %arg1[%c0_15, %c0_16] : memref<16x128xf32, #tpu.memory_space<vmem>>, vector<1x128xf32>
    %20 = arith.addf %18, %19 : vector<1x128xf32>
    %c1_17 = arith.constant 1 : index
    %c0_18 = arith.constant 0 : index
    %21 = vector.load %arg1[%c1_17, %c0_18] : memref<16x128xf32, #tpu.memory_space<vmem>>, vector<1x128xf32>
    %22 = arith.addf %20, %21 : vector<1x128xf32>
    %c2_19 = arith.constant 2 : index
    %c0_20 = arith.constant 0 : index
    %23 = vector.load %arg1[%c2_19, %c0_20] : memref<16x128xf32, #tpu.memory_space<vmem>>, vector<1x128xf32>
    %24 = arith.addf %22, %23 : vector<1x128xf32>
    %cst_21 = arith.constant 2.000000e-01 : f32
    %25 = vector.broadcast %cst_21 : f32 to vector<1x128xf32>
    %26 = arith.mulf %24, %25 : vector<1x128xf32>
    %c0_22 = arith.constant 0 : index
    %c0_23 = arith.constant 0 : index
    %27 = vector.load %arg3[%c0_22, %c0_23] : memref<16x128xf32, #tpu.memory_space<vmem>>, vector<1x128xf32>
    tpu.vector_store %arg3[%c0_22, %c0_23], %26 {strides = array<i32>} : memref<16x128xf32, #tpu.memory_space<vmem>>, vector<1x128xf32>,
    %c0_24 = arith.constant 0 : index
    %c0_25 = arith.constant 0 : index
    %28 = vector.load %arg1[%c0_24, %c0_25] : memref<16x128xf32, #tpu.memory_space<vmem>>, vector<1x128xf32>
    %29 = arith.subf %28, %26 : vector<1x128xf32>
    %c0_26 = arith.constant 0 : index
    %c0_27 = arith.constant 0 : index
    %30 = vector.load %arg2[%c0_26, %c0_27] : memref<16x128xf32, #tpu.memory_space<vmem>>, vector<1x128xf32>
    tpu.vector_store %arg2[%c0_26, %c0_27], %29 {strides = array<i32>} : memref<16x128xf32, #tpu.memory_space<vmem>>, vector<1x128xf32>,
    %31 = arith.subf %24, %15 : vector<1x128xf32>
    %c3_28 = arith.constant 3 : index
    %c0_29 = arith.constant 0 : index
    %32 = vector.load %arg1[%c3_28, %c0_29] : memref<16x128xf32, #tpu.memory_space<vmem>>, vector<1x128xf32>
    %33 = arith.addf %31, %32 : vector<1x128xf32>
    %cst_30 = arith.constant 2.000000e-01 : f32
    %34 = vector.broadcast %cst_30 : f32 to vector<1x128xf32>
    %35 = arith.mulf %33, %34 : vector<1x128xf32>
    %c1_31 = arith.constant 1 : index
    %c0_32 = arith.constant 0 : index
    %36 = vector.load %arg3[%c1_31, %c0_32] : memref<16x128xf32, #tpu.memory_space<vmem>>, vector<1x128xf32>
    tpu.vector_store %arg3[%c1_31, %c0_32], %35 {strides = array<i32>} : memref<16x128xf32, #tpu.memory_space<vmem>>, vector<1x128xf32>,
    %c1_33 = arith.constant 1 : index
    %c0_34 = arith.constant 0 : index
    %37 = vector.load %arg1[%c1_33, %c0_34] : memref<16x128xf32, #tpu.memory_space<vmem>>, vector<1x128xf32>
    %38 = arith.subf %37, %35 : vector<1x128xf32>
    %c1_35 = arith.constant 1 : index
    %c0_36 = arith.constant 0 : index
    %39 = vector.load %arg2[%c1_35, %c0_36] : memref<16x128xf32, #tpu.memory_space<vmem>>, vector<1x128xf32>
    tpu.vector_store %arg2[%c1_35, %c0_36], %38 {strides = array<i32>} : memref<16x128xf32, #tpu.memory_space<vmem>>, vector<1x128xf32>,
    %cst_37 = arith.constant 2.000000e+00 : f32
    %40 = vector.broadcast %cst_37 : f32 to vector<1x128xf32>
    %41 = arith.mulf %16, %40 : vector<1x128xf32>
    %c13 = arith.constant 13 : index
    %c0_38 = arith.constant 0 : index
    %42 = vector.load %arg1[%c13, %c0_38] : memref<16x128xf32, #tpu.memory_space<vmem>>, vector<1x128xf32>
    %43 = arith.addf %41, %42 : vector<1x128xf32>
    %c14 = arith.constant 14 : index
    %c0_39 = arith.constant 0 : index
    %44 = vector.load %arg1[%c14, %c0_39] : memref<16x128xf32, #tpu.memory_space<vmem>>, vector<1x128xf32>
    %45 = arith.addf %43, %44 : vector<1x128xf32>
    %c15_40 = arith.constant 15 : index
    %c0_41 = arith.constant 0 : index
    %46 = vector.load %arg1[%c15_40, %c0_41] : memref<16x128xf32, #tpu.memory_space<vmem>>, vector<1x128xf32>
    %47 = arith.addf %45, %46 : vector<1x128xf32>
    %cst_42 = arith.constant 2.000000e-01 : f32
    %48 = vector.broadcast %cst_42 : f32 to vector<1x128xf32>
    %49 = arith.mulf %47, %48 : vector<1x128xf32>
    %c15_43 = arith.constant 15 : index
    %c0_44 = arith.constant 0 : index
    %50 = vector.load %arg3[%c15_43, %c0_44] : memref<16x128xf32, #tpu.memory_space<vmem>>, vector<1x128xf32>
    tpu.vector_store %arg3[%c15_43, %c0_44], %49 {strides = array<i32>} : memref<16x128xf32, #tpu.memory_space<vmem>>, vector<1x128xf32>,
    %c15_45 = arith.constant 15 : index
    %c0_46 = arith.constant 0 : index
    %51 = vector.load %arg1[%c15_45, %c0_46] : memref<16x128xf32, #tpu.memory_space<vmem>>, vector<1x128xf32>
    %52 = arith.subf %51, %49 : vector<1x128xf32>
    %c15_47 = arith.constant 15 : index
    %c0_48 = arith.constant 0 : index
    %53 = vector.load %arg2[%c15_47, %c0_48] : memref<16x128xf32, #tpu.memory_space<vmem>>, vector<1x128xf32>
    tpu.vector_store %arg2[%c15_47, %c0_48], %52 {strides = array<i32>} : memref<16x128xf32, #tpu.memory_space<vmem>>, vector<1x128xf32>,
    %54 = arith.subf %47, %16 : vector<1x128xf32>
    %c12 = arith.constant 12 : index
    %c0_49 = arith.constant 0 : index
    %55 = vector.load %arg1[%c12, %c0_49] : memref<16x128xf32, #tpu.memory_space<vmem>>, vector<1x128xf32>
    %56 = arith.addf %54, %55 : vector<1x128xf32>
    %cst_50 = arith.constant 2.000000e-01 : f32
    %57 = vector.broadcast %cst_50 : f32 to vector<1x128xf32>
    %58 = arith.mulf %56, %57 : vector<1x128xf32>
    %c14_51 = arith.constant 14 : index
    %c0_52 = arith.constant 0 : index
    %59 = vector.load %arg3[%c14_51, %c0_52] : memref<16x128xf32, #tpu.memory_space<vmem>>, vector<1x128xf32>
    tpu.vector_store %arg3[%c14_51, %c0_52], %58 {strides = array<i32>} : memref<16x128xf32, #tpu.memory_space<vmem>>, vector<1x128xf32>,
    %c14_53 = arith.constant 14 : index
    %c0_54 = arith.constant 0 : index
    %60 = vector.load %arg1[%c14_53, %c0_54] : memref<16x128xf32, #tpu.memory_space<vmem>>, vector<1x128xf32>
    %61 = arith.subf %60, %58 : vector<1x128xf32>
    %c14_55 = arith.constant 14 : index
    %c0_56 = arith.constant 0 : index
    %62 = vector.load %arg2[%c14_55, %c0_56] : memref<16x128xf32, #tpu.memory_space<vmem>>, vector<1x128xf32>
    tpu.vector_store %arg2[%c14_55, %c0_56], %61 {strides = array<i32>} : memref<16x128xf32, #tpu.memory_space<vmem>>, vector<1x128xf32>,
    return
  }
  func.func @transform_0(%arg0: i32) -> (i32, i32) {
    %c0_i32 = arith.constant 0 : i32
    %c0_i32_0 = arith.constant 0 : i32
    return %c0_i32, %arg0 : i32, i32
  }
  func.func @transform_1(%arg0: i32) -> (i32, i32) {
    %c0_i32 = arith.constant 0 : i32
    %c0_i32_0 = arith.constant 0 : i32
    return %c0_i32, %arg0 : i32, i32
  }
  func.func @transform_2(%arg0: i32) -> (i32, i32) {
    %c0_i32 = arith.constant 0 : i32
    %c0_i32_0 = arith.constant 0 : i32
    return %c0_i32, %arg0 : i32, i32
  }
}

</mosaic_0001>

<bundles_post_ra>
// kernel: tpu_custom_call.1
= control target key start
LH: loop header
LB: loop body
LE: loop exit
PB: predicated region body
PF: predicated region fallthrough
CT: control target
= control target key end

     0   :  { %8 = vsyncpa [#allocation3], 0  ;;  %s237_s0 = inlined_call_operand.hbm [shape: f32[16,128], index: 0, kind: input, shape index: {}, may-alias: {0,1}]   ;;  %s238_s1 = inlined_call_operand.hbm [shape: f32[16,128], index: 1, kind: output, shape index: {0}, may-alias: {0,1}]   ;;  %s239_s2 = inlined_call_operand.hbm [shape: f32[16,128], index: 2, kind: output, shape index: {1}]  }
   0x1   :  { %9 = vsyncpa [#allocation4], 0 }
   0x2   :  { %10 = vsyncpa [#allocation7], 0  ;;  %s199_s9 = smov [#allocation2]  }
   0x3   :  { %s16_s10 = sshll.u32 %s199_s9, 4  ;;  %s17_s10 = int_to_ptr.vmem [resolvable:$true] %s16_s10 }
   0x4   :  { %s141_s11 = scalar_lea.vmem %s17_s10, 256  ;;  %p146_p1 = scmp.lt.s32.totalorder %s17_s10, %s17_s10 }
   0x5   :  { %p142_p0 = scmp.ne.s32.totalorder %s17_s10, %s141_s11  ;;  %p147_p2 = scmp.lt.s32.totalorder %s141_s11, %s141_s11 }
   0x7   :  { %p148_p3 = por %p147_p2, %p146_p1 }
   0x9   :  { %p149_p4 = pnand %p148_p3, %p142_p0 }
   0xb   :  { %152 = shalt.err (!%p149_p4)
}
   0xc   :  { %s200_s12 = smov 128   ;;  %s201_s13 = smov 8  }
   0xd   :  { %22 = dma.hbm_to_vmem [thread:$0]  %s237_s0, 256, %s17_s10, [#allocation3], %s200_s12, %s200_s12, %s201_s13  }
   0xe   :  { %193 = dma.done.wait [#allocation3], 256  }
   0xf   :  { %194 = vsyncadd [#allocation3], 4294967040  ;;  %v26_v0 = vld [vmem:[#allocation2] sm:$0xff]  ;;  %v27_v4 = vld [vmem:[#allocation2 + $0x8] sm:$0xf]  ;;  %s202_s0 = smov [#allocation6]  }
  0x10   :  { %v28_v1 = vld [vmem:[#allocation2 + $0x1] sm:$0xff]  ;;  %v29_v6 = vld [vmem:[#allocation2 + $0x9] sm:$0xf]  ;;  %v54_v10 = vld [vmem:[#allocation2] sm:$0x1]  ;;  %s112_s16 = sshll.u32 %s202_s0, 4  ;;  %s113_s16 = int_to_ptr.vmem [resolvable:$true] %s112_s16 }
  0x11   :  { %v32_v2 = vld [vmem:[#allocation2 + $0x2] sm:$0xff]  ;;  %v30_v3 = vadd.f32 %v28_v1, %v26_v0  ;;  %v33_v7 = vld [vmem:[#allocation2 + $0xa] sm:$0xf]  ;;  %v31_v9 = vadd.f32 %v29_v6, %v27_v4  ;;  %v56_v13 = vmul.f32 2.0, %v54_v10  ;;  %v58_v16 = vld [vmem:[#allocation2 + $0x1] sm:$0x1]  ;;  %p158_p6 = scmp.lt.s32.totalorder %s113_s16, %s113_s16 }
  0x12   :  { %v36_v5 = vld [vmem:[#allocation2 + $0x3] sm:$0xff]  ;;  %v37_v12 = vld [vmem:[#allocation2 + $0xb] sm:$0xf]  ;;  %v55_v19 = vld [vmem:[#allocation2 + $0xf] sm:$0x1]  ;;  %s203_s17 = smov [#allocation5]  }
  0x13   :  { %v34_v8 = vadd.f32 %v32_v2, %v30_v3  ;;  %v40_v11 = vld [vmem:[#allocation2 + $0x4] sm:$0xff]  ;;  %v35_v15 = vadd.f32 %v33_v7, %v31_v9  ;;  %v41_v17 = vld [vmem:[#allocation2 + $0xc] sm:$0xf]  ;;  %v57_v18 = vadd.f32 %v56_v13, %v54_v10  ;;  %v60_v23 = vld [vmem:[#allocation2 + $0x2] sm:$0x1]  ;;  %v75_v24 = vmul.f32 2.0, %v55_v19 }
  0x14   :  { %v76_v20 = vld [vmem:[#allocation2 + $0xd] sm:$0x1]  ;;  %v78_v26 = vld [vmem:[#allocation2 + $0xe] sm:$0x1]  ;;  %v80_v32 = vld [vmem:[#allocation2 + $0xf] sm:$0x1] }
  0x15   :  { %v38_v14 = vadd.f32 %v36_v5, %v34_v8  ;;  %v39_v22 = vadd.f32 %v37_v12, %v35_v15  ;;  %v59_v25 = vadd.f32 %v58_v16, %v57_v18  ;;  %v77_v29 = vadd.f32 %v76_v20, %v75_v24  ;;  %v49_v30 = vld [vmem:[#allocation2 + $0xa] sm:$0xf]  ;;  %v64_v35 = vld [vmem:[#allocation2] sm:$0x1]  ;;  %v68_v36 = vld [vmem:[#allocation2 + $0x3] sm:$0x1] }
  0x16   :  { %v84_v44 = vld [vmem:[#allocation2 + $0xf] sm:$0x1]  ;;  %v88_v45 = vld [vmem:[#allocation2 + $0xc] sm:$0x1]  ;;  %v72_v46 = vld [vmem:[#allocation2 + $0x1] sm:$0x1] }
  0x17   :  { %v42_v21 = vadd.f32 %v40_v11, %v38_v14  ;;  %v43_v28 = vadd.f32 %v41_v17, %v39_v22  ;;  %v61_v31 = vadd.f32 %v60_v23, %v59_v25  ;;  %v79_v37 = vadd.f32 %v78_v26, %v77_v29  ;;  %v92_v53 = vld [vmem:[#allocation2 + $0xe] sm:$0x1]  ;;  %s100_s18 = sshll.u32 %s203_s17, 4  ;;  %s153_s19 = scalar_lea.vmem %s113_s16, 256  ;;  %s101_s18 = int_to_ptr.vmem [resolvable:$true] %s100_s18 }
  0x18   :  { %p154_p5 = scmp.ne.s32.totalorder %s113_s16, %s153_s19  ;;  %p159_p7 = scmp.lt.s32.totalorder %s153_s19, %s153_s19 }
  0x19   :  { %v44_v27 = vmul.f32 0.2, %v42_v21  ;;  %v45_v33 = vmul.f32 0.2, %v43_v28  ;;  %v62_v38 = vmul.f32 0.2, %v61_v31  ;;  %v67_v39 = vsub.f32 %v61_v31, %v54_v10 }
  0x1a   :  { %v81_v41 = vadd.f32 %v80_v32, %v79_v37  ;;  %p160_p8 = por %p159_p7, %p158_p6 }
  0x1b   :  { %46 = vst [vmem:[#allocation6 + $0x2] sm:$0xff] %v44_v27  ;;  %v50_v34 = vsub.f32 %v32_v2, %v44_v27  ;;  %47 = vst [vmem:[#allocation6 + $0xa] sm:$0xf] %v45_v33  ;;  %v51_v40 = vsub.f32 %v49_v30, %v45_v33  ;;  %v65_v42 = vsub.f32 %v64_v35, %v62_v38 }
  0x1c   :  { %63 = vst [vmem:[#allocation6] sm:$0x1] %v62_v38  ;;  %v69_v43 = vadd.f32 %v68_v36, %v67_v39  ;;  %v82_v47 = vmul.f32 0.2, %v81_v41  ;;  %v87_v48 = vsub.f32 %v81_v41, %v55_v19  ;;  %p161_p9 = pnand %p160_p8, %p154_p5 }
  0x1d   :  { %52 = vst [vmem:[#allocation5 + $0x2] sm:$0xff] %v50_v34  ;;  %53 = vst [vmem:[#allocation5 + $0xa] sm:$0xf] %v51_v40 }
  0x1e   :  { %66 = vst [vmem:[#allocation5] sm:$0x1] %v65_v42  ;;  %v70_v49 = vmul.f32 0.2, %v69_v43  ;;  %83 = vst [vmem:[#allocation6 + $0xf] sm:$0x1] %v82_v47  ;;  %v85_v50 = vsub.f32 %v84_v44, %v82_v47  ;;  %v89_v51 = vadd.f32 %v88_v45, %v87_v48 }
  0x20   :  { %71 = vst [vmem:[#allocation6 + $0x1] sm:$0x1] %v70_v49  ;;  %v73_v52 = vsub.f32 %v72_v46, %v70_v49  ;;  %86 = vst [vmem:[#allocation5 + $0xf] sm:$0x1] %v85_v50  ;;  %v90_v54 = vmul.f32 0.2, %v89_v51 }
  0x22   :  { %74 = vst [vmem:[#allocation5 + $0x1] sm:$0x1] %v73_v52  ;;  %91 = vst [vmem:[#allocation6 + $0xe] sm:$0x1] %v90_v54  ;;  %v93_v55 = vsub.f32 %v92_v53, %v90_v54 }
  0x23   :  { %164 = shalt.err (!%p161_p9)
}
  0x24   :  { %118 = dma.vmem_to_hbm [thread:$0]  %s113_s16, 256, %s239_s2, [#allocation7], %s200_s12, %s200_s12, %s201_s13   ;;  %94 = vst [vmem:[#allocation5 + $0xe] sm:$0x1] %v93_v55 }
  0x25   :  { %s173_s22 = scalar_lea.vmem %s101_s18, 256  ;;  %p178_p11 = scmp.lt.s32.totalorder %s101_s18, %s101_s18 }
  0x26   :  { %p174_p10 = scmp.ne.s32.totalorder %s101_s18, %s173_s22  ;;  %p179_p12 = scmp.lt.s32.totalorder %s173_s22, %s173_s22 }
  0x28   :  { %p180_p13 = por %p179_p12, %p178_p11 }
  0x2a   :  { %p181_p0 = pnand %p180_p13, %p174_p10 }
  0x2c   :  { %184 = shalt.err (!%p181_p0)
}
  0x2d   :  { %106 = dma.vmem_to_hbm [thread:$0]  %s101_s18, 256, %s238_s1, [#allocation4], %s200_s12, %s200_s12, %s201_s13  }
  0x2e   :  { %195 = dma.done.wait [#allocation4], 256  }
  0x2f   :  { %196 = vsyncadd [#allocation4], 4294967040 }
  0x30   :  { %197 = dma.done.wait [#allocation7], 256  }
  0x31   :  { %198 = vsyncadd [#allocation7], 4294967040 }
  0x32   :  { %125 = vsyncpa [#allocation3], 1 }
  0x33   :  { %126 = vsyncpa [#allocation4], 1 }
  0x34   :  { %127 = vsyncpa [#allocation7], 1 }

</bundles_post_ra>
